<compile_context>
chip_gen: v7x
topology: tpu7x:2x2x1
jax: 0.10.0
libtpu: 0.0.40
codegen_flags: <defaults>
</compile_context>

<pallas_src>
import jax
import jax.numpy as jnp
from jax.experimental import pallas as pl
from jax.experimental.pallas import tpu as pltpu

IN_F = 2
HID_F = 5
NUM_CLASSES = 2

_LANE = 128
_DEFAULT_TILE_B = 128 * 1024   # columns / grid step -> 1 MiB f32 input block
_MIN_GRID_STEPS = 4            # keep >=4 steps on big batches (v7x megacore)


def _round_up(n, m):
    return ((n + m - 1) // m) * m


def _fused_linear_kernel(wb_ref, x_ref, o_ref):
    """out[c, :] = Wf[0,c]*x[0,:] + Wf[1,c]*x[1,:] + bf[c]  (full-lane rows).

    wb_ref : SMEM (3*C,) f32 packed as [Wf[0, :], Wf[1, :], bf]
    x_ref  : VMEM (IN_F, TILE_B) f32   (feature-major, lane-dense)
    o_ref  : VMEM (C,    TILE_B) f32   (class-major, lane-dense)
    """
    num_classes = o_ref.shape[0]
    x0 = x_ref[0:1, :]          # (1, TILE_B)
    x1 = x_ref[1:2, :]          # (1, TILE_B)
    for c in range(num_classes):            # tiny static unroll (C == 2)
        o_ref[c:c + 1, :] = (x0 * wb_ref[c]
                             + x1 * wb_ref[num_classes + c]
                             + wb_ref[2 * num_classes + c])


def fuse_params(w1, b1, w2, b2):
    """Fold Linear(2,5) + Linear(5,C) into one affine map (done ONCE).

    w1: [2, 5], b1: [5], w2: [5, C], b2: [C]  (weights stored [in, out]).
    Returns packed (3*C,) f32: [Wf[0, :], Wf[1, :], bf].
    """
    w_fused = jnp.dot(w1, w2)          # [2, C]
    b_fused = jnp.dot(b1, w2) + b2     # [C]
    return jnp.concatenate(
        [w_fused.reshape(-1), b_fused.reshape(-1)]).astype(jnp.float32)


def moons_mlp_forward(x, wb, *, tile_b=_DEFAULT_TILE_B):
    """x: [B, 2] float; wb: packed fused params from fuse_params(). Returns [B, C]."""
    batch, in_f = x.shape
    num_classes = wb.shape[0] // 3

    # Lane tile: multiple of 128, MiB-scale when the batch allows it, capped so
    # large batches keep >= _MIN_GRID_STEPS grid steps (v7x 2-TC sharding).
    tb = min(tile_b, _round_up(max(batch, 1), _LANE))
    if batch > _MIN_GRID_STEPS * _LANE:
        tb = min(tb, _round_up(-(-batch // _MIN_GRID_STEPS), _LANE))
    tb = _round_up(tb, _LANE)
    b_pad = _round_up(batch, tb)

    # Feature-major, lane-dense view of x: [IN_F, B_pad] (layout plumbing only).
    xt = x.astype(jnp.float32).T
    if b_pad != batch:
        xt = jnp.pad(xt, ((0, 0), (0, b_pad - batch)))

    out_cm = pl.pallas_call(
        _fused_linear_kernel,
        out_shape=jax.ShapeDtypeStruct((num_classes, b_pad), jnp.float32),
        grid=(b_pad // tb,),
        in_specs=[
            # Tiny fused weight/bias vector, whole-array in SMEM.
            pl.BlockSpec(memory_space=pltpu.MemorySpace.SMEM),
            # Feature-major x block; first dim == full array dim (2) is legal.
            pl.BlockSpec((in_f, tb), lambda i: (0, i)),
        ],
        out_specs=pl.BlockSpec((num_classes, tb), lambda i: (0, i)),
        compiler_params=pltpu.CompilerParams(
            dimension_semantics=("parallel",),
            vmem_limit_bytes=32 * 1024 * 1024,
        ),
    )(wb, xt)

    # Padded columns evaluate to the bias vector; slice off, back to [B, C].
    return out_cm[:, :batch].T


def init_params(key, num_classes=NUM_CLASSES):
    """Deterministic init mimicking torch.nn.Linear default (+/- 1/sqrt(fan_in))."""
    k1, k2, k3, k4 = jax.random.split(key, 4)
    bound1 = 1.0 / (IN_F ** 0.5)
    bound2 = 1.0 / (HID_F ** 0.5)
    # Stored as [in_features, out_features] (torch weight transposed).
    w1 = jax.random.uniform(k1, (IN_F, HID_F), jnp.float32, -bound1, bound1)
    b1 = jax.random.uniform(k2, (HID_F,), jnp.float32, -bound1, bound1)
    w2 = jax.random.uniform(k3, (HID_F, num_classes), jnp.float32, -bound2, bound2)
    b2 = jax.random.uniform(k4, (num_classes,), jnp.float32, -bound2, bound2)
    return w1, b1, w2, b2


if __name__ == "__main__":
    key = jax.random.PRNGKey(0)
    k_x, k_p = jax.random.split(key)

    w1, b1, w2, b2 = init_params(k_p)
    wb = fuse_params(w1, b1, w2, b2)   # fuse once at param-load time

    for batch in (8, 333):             # small shapes; 333 exercises padding
        kx = jax.random.fold_in(k_x, batch)
        x = jax.random.normal(kx, (batch, IN_F), jnp.float32)
        out = jax.block_until_ready(moons_mlp_forward(x, wb))

        # Pure-JAX reference of the original two-layer forward.
        ref = (x @ w1 + b1) @ w2 + b2
        assert out.shape == (batch, NUM_CLASSES)
        assert jnp.allclose(out, ref, atol=1e-5, rtol=1e-5)

    print("KERNEL_OK")
</pallas_src>

<mosaic_0001>
module attributes {stable_mosaic.version = 11 : i64} {
  func.func @_fused_linear_kernel(%arg0: i32, %arg1: memref<6xf32, #tpu.memory_space<smem>>, %arg2: memref<2x128xf32, #tpu.memory_space<vmem>>, %arg3: memref<2x128xf32, #tpu.memory_space<vmem>>) attributes {dimension_semantics = [#tpu.dimension_semantics<parallel>], iteration_bounds = array<i64: 1>, scalar_prefetch = 0 : i64, scratch_operands = 0 : i64, tpu.core_type = #tpu.core_type<tc>, window_params = [{transform_indices = @transform_0, window_bounds = array<i64: 6>}, {transform_indices = @transform_1, window_bounds = array<i64: 2, 128>}, {transform_indices = @transform_2, window_bounds = array<i64: 2, 128>}]} {
    %c0 = arith.constant 0 : index
    %c0_0 = arith.constant 0 : index
    %0 = vector.load %arg2[%c0, %c0_0] : memref<2x128xf32, #tpu.memory_space<vmem>>, vector<1x128xf32>
    %c1 = arith.constant 1 : index
    %c0_1 = arith.constant 0 : index
    %1 = vector.load %arg2[%c1, %c0_1] : memref<2x128xf32, #tpu.memory_space<vmem>>, vector<1x128xf32>
    %c0_2 = arith.constant 0 : index
    %2 = memref.load %arg1[%c0_2] : memref<6xf32, #tpu.memory_space<smem>>
    %3 = vector.broadcast %2 : f32 to vector<1x128xf32>
    %4 = arith.mulf %0, %3 : vector<1x128xf32>
    %c2 = arith.constant 2 : index
    %5 = memref.load %arg1[%c2] : memref<6xf32, #tpu.memory_space<smem>>
    %6 = vector.broadcast %5 : f32 to vector<1x128xf32>
    %7 = arith.mulf %1, %6 : vector<1x128xf32>
    %8 = arith.addf %4, %7 : vector<1x128xf32>
    %c4 = arith.constant 4 : index
    %9 = memref.load %arg1[%c4] : memref<6xf32, #tpu.memory_space<smem>>
    %10 = vector.broadcast %9 : f32 to vector<1x128xf32>
    %11 = arith.addf %8, %10 : vector<1x128xf32>
    %c0_3 = arith.constant 0 : index
    %c0_4 = arith.constant 0 : index
    %12 = vector.load %arg3[%c0_3, %c0_4] : memref<2x128xf32, #tpu.memory_space<vmem>>, vector<1x128xf32>
    tpu.vector_store %arg3[%c0_3, %c0_4], %11 {strides = array<i32>} : memref<2x128xf32, #tpu.memory_space<vmem>>, vector<1x128xf32>,
    %c1_5 = arith.constant 1 : index
    %13 = memref.load %arg1[%c1_5] : memref<6xf32, #tpu.memory_space<smem>>
    %14 = vector.broadcast %13 : f32 to vector<1x128xf32>
    %15 = arith.mulf %0, %14 : vector<1x128xf32>
    %c3 = arith.constant 3 : index
    %16 = memref.load %arg1[%c3] : memref<6xf32, #tpu.memory_space<smem>>
    %17 = vector.broadcast %16 : f32 to vector<1x128xf32>
    %18 = arith.mulf %1, %17 : vector<1x128xf32>
    %19 = arith.addf %15, %18 : vector<1x128xf32>
    %c5 = arith.constant 5 : index
    %20 = memref.load %arg1[%c5] : memref<6xf32, #tpu.memory_space<smem>>
    %21 = vector.broadcast %20 : f32 to vector<1x128xf32>
    %22 = arith.addf %19, %21 : vector<1x128xf32>
    %c1_6 = arith.constant 1 : index
    %c0_7 = arith.constant 0 : index
    %23 = vector.load %arg3[%c1_6, %c0_7] : memref<2x128xf32, #tpu.memory_space<vmem>>, vector<1x128xf32>
    tpu.vector_store %arg3[%c1_6, %c0_7], %22 {strides = array<i32>} : memref<2x128xf32, #tpu.memory_space<vmem>>, vector<1x128xf32>,
    return
  }
  func.func @transform_0(%arg0: i32) -> i32 {
    %c0_i32 = arith.constant 0 : i32
    %c0_i32_0 = arith.constant 0 : i32
    return %c0_i32 : i32
  }
  func.func @transform_1(%arg0: i32) -> (i32, i32) {
    %c0_i32 = arith.constant 0 : i32
    %c0_i32_0 = arith.constant 0 : i32
    return %c0_i32, %arg0 : i32, i32
  }
  func.func @transform_2(%arg0: i32) -> (i32, i32) {
    %c0_i32 = arith.constant 0 : i32
    %c0_i32_0 = arith.constant 0 : i32
    return %c0_i32, %arg0 : i32, i32
  }
}

</mosaic_0001>

<bundles_post_ra>
// kernel: tpu_custom_call.1
= control target key start
LH: loop header
LB: loop body
LE: loop exit
PB: predicated region body
PF: predicated region fallthrough
CT: control target
= control target key end

     0   :  { %7 = vsyncpa [#allocation4], 0  ;;  %s152_s0 = inlined_call_operand.hbm [shape: f32[6], index: 0, kind: input, shape index: {}]   ;;  %s153_s1 = inlined_call_operand.vmem [shape: f32[2,128], index: 1, kind: input, shape index: {}]   ;;  %s154_s2 = inlined_call_operand.hbm [shape: f32[2,128], index: 2, kind: output, shape index: {}]  }
   0x1   :  { %8 = vsyncpa [#allocation3], 0  ;;  %s69_s11 = scalar_lea.hbm %s152_s0, 16 }
   0x2   :  { %p70_p0 = scmp.ne.s32.totalorder %s152_s0, %s69_s11  ;;  %p73_p1 = scmp.lt.u32.totalorder %s69_s11, %s152_s0 }
   0x4   :  { %p75_p2 = pnand %p73_p1, %p70_p0 }
   0x6   :  { %78 = shalt.err (!%p75_p2)
}
   0x7   :  { %s105_s16 = smov [#allocation2]  }
   0x8   :  { %16 = dma.hbm_to_smem %s152_s0, 16, %s105_s16, [#allocation4]  }
   0x9   :  { %101 = dma.done.wait [#allocation4], 16  }
   0xa   :  { %102 = vsyncadd [#allocation4], 4294967280 }
   0xb   :  { %22 = sfence }
   0xc   :  { %s25_s19 = sld [smem:[#allocation2]]  ;;  %s62_s20 = sld [smem:[#allocation2 + $0x2]]  ;;  %v23_v0 = vld [vmem:[%s153_s1] sm:$0x1]  ;;  %v24_v1 = vld [vmem:[%s153_s1 + $0x1] sm:$0x1] }
   0xd   :  { %s63_s21 = sld [smem:[#allocation2 + $0x4]]  ;;  %s64_s22 = sld [smem:[#allocation2 + $0x1]] }
   0xe   :  { %s65_s23 = sld [smem:[#allocation2 + $0x3]]  ;;  %s66_s24 = sld [smem:[#allocation2 + $0x5]] }
   0xf   :  { %s106_s0 = smov [#allocation5]  }
  0x10   :  { %s53_s29 = sshll.u32 %s106_s0, 4  ;;  %s54_s29 = int_to_ptr.vmem [resolvable:$true] %s53_s29 }
  0x11   :  { %s79_s1 = scalar_lea.vmem %s54_s29, 32  ;;  %p84_p4 = scmp.lt.s32.totalorder %s54_s29, %s54_s29 }
  0x12   :  { %v26_v2 = vstv %s25_s19  ;;  %v29_v4 = vstv %s62_s20  ;;  %p80_p3 = scmp.ne.s32.totalorder %s54_s29, %s79_s1  ;;  %p85_p5 = scmp.lt.s32.totalorder %s79_s1, %s79_s1 }
  0x13   :  { %v27_v3 = vmul.f32 %v26_v2, %v23_v0  ;;  %v30_v5 = vmul.f32 %v29_v4, %v24_v1  ;;  %v37_v6 = vstv %s64_s22  ;;  %v33_v8 = vstv %s63_s21 }
  0x14   :  { %v40_v7 = vstv %s65_s23  ;;  %v38_v9 = vmul.f32 %v37_v6, %v23_v0  ;;  %v44_v12 = vstv %s66_s24  ;;  %p86_p6 = por %p85_p5, %p84_p4 }
  0x15   :  { %v41_v10 = vmul.f32 %v40_v7, %v24_v1  ;;  %v31_v11 = vadd.f32 %v30_v5, %v27_v3 }
  0x16   :  { %p87_p7 = pnand %p86_p6, %p80_p3 }
  0x17   :  { %v42_v13 = vadd.f32 %v41_v10, %v38_v9  ;;  %v34_v14 = vadd.f32 %v33_v8, %v31_v11 }
  0x19   :  { %v45_v15 = vadd.f32 %v44_v12, %v42_v13  ;;  %35 = vst [vmem:[#allocation5] sm:$0x1] %v34_v14 }
  0x1b   :  { %46 = vst [vmem:[#allocation5 + $0x1] sm:$0x1] %v45_v15 }
  0x1c   :  { %90 = shalt.err (!%p87_p7)
}
  0x1d   :  { %s91_s4 = scalar_lea.hbm %s154_s2, 32 }
  0x1e   :  { %p92_p8 = scmp.ne.s32.totalorder %s154_s2, %s91_s4  ;;  %p95_p9 = scmp.lt.u32.totalorder %s91_s4, %s154_s2 }
  0x20   :  { %p97_p10 = pnand %p95_p9, %p92_p8 }
  0x22   :  { %100 = shalt.err (!%p97_p10)
}
  0x23   :  { %56 = dma.vmem_to_hbm [thread:$0]  %s54_s29, 32, %s154_s2, [#allocation3]  }
  0x24   :  { %103 = dma.done.wait [#allocation3], 32  }
  0x25   :  { %104 = vsyncadd [#allocation3], 4294967264 }
  0x26   :  { %60 = vsyncpa [#allocation3], 1 }
  0x27   :  { %61 = vsyncpa [#allocation4], 1 }

</bundles_post_ra>
